<compile_context>
chip_gen: v7x
topology: tpu7x:2x2x1
jax: 0.10.0
libtpu: 0.0.40
codegen_flags: <defaults>
</compile_context>

<pallas_src>
import functools
import math

import jax
import jax.numpy as jnp
from jax import lax
from jax.experimental import pallas as pl
from jax.experimental.pallas import tpu as pltpu


def single_rnn_kernel(
    x_ref, wih0_ref, bfull_ref, wbig_ref, wfc_ref, bfc_ref, out_ref,
    *, seq_len, batch, hidden, num_layers,
):
    T, B, H, L = seq_len, batch, hidden, num_layers
    HL = L * H

    # (1) Layer-0 input projection for ALL timesteps in one matmul (lane-padded weight also
    #     drops the per-layer biases into the right gate columns).
    bfull = bfull_ref[...]                                              # (1, L*H)
    xfull = (
        jnp.dot(x_ref[...], wih0_ref[...], preferred_element_type=jnp.float32)
        + bfull
    )                                                                   # (T*B, L*H)

    wbig = wbig_ref[...]                                                # (L*H, L*H)
    lane = lax.broadcasted_iota(jnp.int32, (B, HL), 1)                  # hoisted constant

    h_all = jnp.zeros((B, HL), jnp.float32)                             # [h^0 | h^1 | h^2]

    # (2) Wavefront over wall-steps: at wall-step s, layer l advances its time index to
    #     s - l.  Every layer reads only the PREVIOUS wall-step's state, so the whole step
    #     collapses to one fused (B, L*H) @ (L*H, L*H) matmul and one full-width tanh.
    #     Static Python unroll so the LLO scheduler can overlap consecutive wall-steps.
    for s in range(T + L - 1):
        add = xfull[s * B:(s + 1) * B, :] if s < T else bfull           # col 0:H unused when s>=T
        act = jnp.tanh(
            jnp.dot(h_all, wbig, preferred_element_type=jnp.float32) + add
        )
        lo = max(0, s - (T - 1))          # first active layer at this wall-step
        hi = min(L - 1, s)                # last active layer at this wall-step
        if lo == 0 and hi == L - 1:
            h_all = act                   # steady state: full overwrite, no select needed
        else:
            mask = (lane >= lo * H) & (lane < (hi + 1) * H)
            h_all = jnp.where(mask, act, h_all)

    # (3) Final FC on all layers' last hidden states.  Block-diagonal weight keeps the
    #     result lane-concatenated, so there is no lane->sublane reshape and only ONE store.
    out_ref[...] = (
        jnp.dot(h_all, wfc_ref[...], preferred_element_type=jnp.float32) + bfc_ref[...]
    ).astype(out_ref.dtype)


def init_params(key, num_classes, input_size, hidden_size, num_layers):
    """nn.RNN / nn.Linear shaped params, uniform(-1/sqrt(H), 1/sqrt(H)) like PyTorch."""
    k = 1.0 / math.sqrt(hidden_size)
    layers = []
    in_dim = input_size
    for _ in range(num_layers):
        key, k1, k2, k3, k4 = jax.random.split(key, 5)
        w_ih = jax.random.uniform(k1, (hidden_size, in_dim), jnp.float32, -k, k)
        w_hh = jax.random.uniform(k2, (hidden_size, hidden_size), jnp.float32, -k, k)
        b_ih = jax.random.uniform(k3, (hidden_size,), jnp.float32, -k, k)
        b_hh = jax.random.uniform(k4, (hidden_size,), jnp.float32, -k, k)
        layers.append((w_ih, w_hh, b_ih, b_hh))
        in_dim = hidden_size
    key, kf1, kf2 = jax.random.split(key, 3)
    w_fc = jax.random.uniform(kf1, (num_classes, hidden_size), jnp.float32, -k, k)
    b_fc = jax.random.uniform(kf2, (num_classes,), jnp.float32, -k, k)
    return layers, (w_fc, b_fc)


@functools.partial(jax.jit, static_argnames=("num_classes", "hidden_size", "num_layers"))
def single_rnn_forward(x, layer_params, fc_params, *, num_classes, hidden_size, num_layers):
    """Mirrors singleRNN.forward (eval mode). x: (B, T, input_size) -> (num_layers*B, C)."""
    B, T, Din = x.shape
    H, L, C = hidden_size, num_layers, num_classes

    # ---- pack params into the fused / transposed kernel layout (tiny, fused by XLA) ----
    w_ih0, w_hh0, b_ih0, b_hh0 = layer_params[0]
    wih0p = jnp.zeros((Din, L * H), jnp.float32).at[:, :H].set(w_ih0.T)

    bfull = jnp.concatenate(
        [(b_ih + b_hh) for (_, _, b_ih, b_hh) in layer_params], axis=0
    ).reshape(1, L * H)

    wbig = jnp.zeros((L * H, L * H), jnp.float32)
    for l, (w_ih, w_hh, _, _) in enumerate(layer_params):
        wbig = wbig.at[l * H:(l + 1) * H, l * H:(l + 1) * H].set(w_hh.T)
        if l > 0:  # input of layer l is hidden of layer l-1
            wbig = wbig.at[(l - 1) * H:l * H, l * H:(l + 1) * H].set(w_ih.T)

    w_fc, b_fc = fc_params
    wfc_big = jnp.zeros((L * H, L * C), jnp.float32)
    for l in range(L):
        wfc_big = wfc_big.at[l * H:(l + 1) * H, l * C:(l + 1) * C].set(w_fc.T)
    bfc_big = jnp.tile(b_fc, L).reshape(1, L * C)

    # time-major, batch-minor rows so row block [s*B:(s+1)*B] is timestep s
    x2d = jnp.transpose(x.astype(jnp.float32), (1, 0, 2)).reshape(T * B, Din)

    vmem = pl.BlockSpec(memory_space=pltpu.MemorySpace.VMEM)
    out = pl.pallas_call(
        functools.partial(
            single_rnn_kernel, seq_len=T, batch=B, hidden=H, num_layers=L
        ),
        out_shape=jax.ShapeDtypeStruct((B, L * C), jnp.float32),
        in_specs=[vmem] * 6,
        out_specs=vmem,
    )(x2d, wih0p, bfull, wbig, wfc_big, bfc_big)

    # reorder to PyTorch's fc(h_n.view(-1, H)) row order: row = l * B + b
    return out.reshape(B, L, C).transpose(1, 0, 2).reshape(L * B, C)


def _reference_forward(x, layer_params, fc_params):
    """Pure-JAX eval-mode reference of singleRNN.forward for a correctness check."""
    B, T, _ = x.shape
    L = len(layer_params)
    H = layer_params[0][1].shape[0]
    hp = jax.lax.Precision.HIGHEST
    h = [jnp.zeros((B, H), jnp.float32) for _ in range(L)]
    for t in range(T):
        inp = x[:, t, :].astype(jnp.float32)
        for l, (w_ih, w_hh, b_ih, b_hh) in enumerate(layer_params):
            pre = (jnp.dot(inp, w_ih.T, precision=hp) + b_ih
                   + jnp.dot(h[l], w_hh.T, precision=hp) + b_hh)
            h[l] = jnp.tanh(pre)
            inp = h[l]  # TODO(synk): train-mode inter-layer dropout(0.25) omitted (eval)
    h_out = jnp.stack(h, axis=0).reshape(L * B, H)
    w_fc, b_fc = fc_params
    return jnp.dot(h_out, w_fc.T, precision=hp) + b_fc  # output dropout(0.2) = identity in eval


if __name__ == "__main__":
    num_classes = 8
    input_size = 8
    hidden_size = 32
    num_layers = 3
    seq_len = 8
    batch = 2

    key = jax.random.PRNGKey(0)
    key, xkey = jax.random.split(key)
    x = jax.random.normal(xkey, (batch, seq_len, input_size), jnp.float32)

    layer_params, fc_params = init_params(
        key, num_classes, input_size, hidden_size, num_layers
    )

    out = single_rnn_forward(
        x, layer_params, fc_params,
        num_classes=num_classes, hidden_size=hidden_size, num_layers=num_layers,
    )
    jax.block_until_ready(out)

    # shape matches PyTorch: fc(h_n.view(-1, H)) -> (num_layers * batch, num_classes)
    assert out.shape == (num_layers * batch, num_classes)

    ref = _reference_forward(x, layer_params, fc_params)
    assert jnp.allclose(out, ref, atol=1e-4, rtol=1e-4), (
        float(jnp.max(jnp.abs(out - ref)))
    )

    print("KERNEL_OK")
</pallas_src>

<mosaic_0001>
module attributes {stable_mosaic.version = 11 : i64} {
  func.func @single_rnn_kernel(%arg0: memref<16x8xf32, #tpu.memory_space<vmem>>, %arg1: memref<8x96xf32, #tpu.memory_space<vmem>>, %arg2: memref<1x96xf32, #tpu.memory_space<vmem>>, %arg3: memref<96x96xf32, #tpu.memory_space<vmem>>, %arg4: memref<96x24xf32, #tpu.memory_space<vmem>>, %arg5: memref<1x24xf32, #tpu.memory_space<vmem>>, %arg6: memref<2x24xf32, #tpu.memory_space<vmem>>) attributes {dimension_semantics = [], scalar_prefetch = 0 : i64, scratch_operands = 0 : i64, tpu.core_type = #tpu.core_type<tc>} {
    %c0 = arith.constant 0 : index
    %c0_0 = arith.constant 0 : index
    %0 = vector.load %arg2[%c0, %c0_0] : memref<1x96xf32, #tpu.memory_space<vmem>>, vector<1x96xf32>
    %c0_1 = arith.constant 0 : index
    %c0_2 = arith.constant 0 : index
    %1 = vector.load %arg0[%c0_1, %c0_2] : memref<16x8xf32, #tpu.memory_space<vmem>>, vector<16x8xf32>
    %c0_3 = arith.constant 0 : index
    %c0_4 = arith.constant 0 : index
    %2 = vector.load %arg1[%c0_3, %c0_4] : memref<8x96xf32, #tpu.memory_space<vmem>>, vector<8x96xf32>
    %cst = arith.constant dense<0.000000e+00> : vector<16x96xf32>
    %3 = tpu.matmul %1, %2, %cst {dimension_numbers = #tpu.dot_dimension_numbers<[1], [0], [0], [1], [0, 0, 1, 1], [], []>} : vector<16x8xf32>, vector<8x96xf32>, vector<16x96xf32> -> vector<16x96xf32>
    %4 = vector.broadcast %0 : vector<1x96xf32> to vector<16x96xf32>
    %5 = arith.addf %3, %4 : vector<16x96xf32>
    %c0_5 = arith.constant 0 : index
    %c0_6 = arith.constant 0 : index
    %6 = vector.load %arg3[%c0_5, %c0_6] : memref<96x96xf32, #tpu.memory_space<vmem>>, vector<96x96xf32>
    %7 = tpu.iota {dimensions = array<i32: 1>} : vector<2x96xi32>
    %cst_7 = arith.constant 0.000000e+00 : f32
    %8 = vector.broadcast %cst_7 : f32 to vector<2x96xf32>
    %9 = vector.extract_strided_slice %5 {offsets = [0, 0], sizes = [2, 96], strides = [1, 1]} : vector<16x96xf32> to vector<2x96xf32>
    %cst_8 = arith.constant dense<0.000000e+00> : vector<2x96xf32>
    %10 = tpu.matmul %8, %6, %cst_8 {dimension_numbers = #tpu.dot_dimension_numbers<[1], [0], [0], [1], [0, 0, 1, 1], [], []>} : vector<2x96xf32>, vector<96x96xf32>, vector<2x96xf32> -> vector<2x96xf32>
    %11 = arith.addf %10, %9 : vector<2x96xf32>
    %12 = math.tanh %11 : vector<2x96xf32>
    %c0_i32 = arith.constant 0 : i32
    %13 = vector.broadcast %c0_i32 : i32 to vector<2x96xi32>
    %14 = arith.cmpi sge, %7, %13 : vector<2x96xi32>
    %c32_i32 = arith.constant 32 : i32
    %15 = vector.broadcast %c32_i32 : i32 to vector<2x96xi32>
    %16 = arith.cmpi slt, %7, %15 : vector<2x96xi32>
    %17 = arith.andi %14, %16 : vector<2x96xi1>
    %18 = arith.select %17, %12, %8 : vector<2x96xi1>, vector<2x96xf32>
    %19 = vector.extract_strided_slice %5 {offsets = [2, 0], sizes = [2, 96], strides = [1, 1]} : vector<16x96xf32> to vector<2x96xf32>
    %cst_9 = arith.constant dense<0.000000e+00> : vector<2x96xf32>
    %20 = tpu.matmul %18, %6, %cst_9 {dimension_numbers = #tpu.dot_dimension_numbers<[1], [0], [0], [1], [0, 0, 1, 1], [], []>} : vector<2x96xf32>, vector<96x96xf32>, vector<2x96xf32> -> vector<2x96xf32>
    %21 = arith.addf %20, %19 : vector<2x96xf32>
    %22 = math.tanh %21 : vector<2x96xf32>
    %c0_i32_10 = arith.constant 0 : i32
    %23 = vector.broadcast %c0_i32_10 : i32 to vector<2x96xi32>
    %24 = arith.cmpi sge, %7, %23 : vector<2x96xi32>
    %c64_i32 = arith.constant 64 : i32
    %25 = vector.broadcast %c64_i32 : i32 to vector<2x96xi32>
    %26 = arith.cmpi slt, %7, %25 : vector<2x96xi32>
    %27 = arith.andi %24, %26 : vector<2x96xi1>
    %28 = arith.select %27, %22, %18 : vector<2x96xi1>, vector<2x96xf32>
    %29 = vector.extract_strided_slice %5 {offsets = [4, 0], sizes = [2, 96], strides = [1, 1]} : vector<16x96xf32> to vector<2x96xf32>
    %cst_11 = arith.constant dense<0.000000e+00> : vector<2x96xf32>
    %30 = tpu.matmul %28, %6, %cst_11 {dimension_numbers = #tpu.dot_dimension_numbers<[1], [0], [0], [1], [0, 0, 1, 1], [], []>} : vector<2x96xf32>, vector<96x96xf32>, vector<2x96xf32> -> vector<2x96xf32>
    %31 = arith.addf %30, %29 : vector<2x96xf32>
    %32 = math.tanh %31 : vector<2x96xf32>
    %33 = vector.extract_strided_slice %5 {offsets = [6, 0], sizes = [2, 96], strides = [1, 1]} : vector<16x96xf32> to vector<2x96xf32>
    %cst_12 = arith.constant dense<0.000000e+00> : vector<2x96xf32>
    %34 = tpu.matmul %32, %6, %cst_12 {dimension_numbers = #tpu.dot_dimension_numbers<[1], [0], [0], [1], [0, 0, 1, 1], [], []>} : vector<2x96xf32>, vector<96x96xf32>, vector<2x96xf32> -> vector<2x96xf32>
    %35 = arith.addf %34, %33 : vector<2x96xf32>
    %36 = math.tanh %35 : vector<2x96xf32>
    %37 = vector.extract_strided_slice %5 {offsets = [8, 0], sizes = [2, 96], strides = [1, 1]} : vector<16x96xf32> to vector<2x96xf32>
    %cst_13 = arith.constant dense<0.000000e+00> : vector<2x96xf32>
    %38 = tpu.matmul %36, %6, %cst_13 {dimension_numbers = #tpu.dot_dimension_numbers<[1], [0], [0], [1], [0, 0, 1, 1], [], []>} : vector<2x96xf32>, vector<96x96xf32>, vector<2x96xf32> -> vector<2x96xf32>
    %39 = arith.addf %38, %37 : vector<2x96xf32>
    %40 = math.tanh %39 : vector<2x96xf32>
    %41 = vector.extract_strided_slice %5 {offsets = [10, 0], sizes = [2, 96], strides = [1, 1]} : vector<16x96xf32> to vector<2x96xf32>
    %cst_14 = arith.constant dense<0.000000e+00> : vector<2x96xf32>
    %42 = tpu.matmul %40, %6, %cst_14 {dimension_numbers = #tpu.dot_dimension_numbers<[1], [0], [0], [1], [0, 0, 1, 1], [], []>} : vector<2x96xf32>, vector<96x96xf32>, vector<2x96xf32> -> vector<2x96xf32>
    %43 = arith.addf %42, %41 : vector<2x96xf32>
    %44 = math.tanh %43 : vector<2x96xf32>
    %45 = vector.extract_strided_slice %5 {offsets = [12, 0], sizes = [2, 96], strides = [1, 1]} : vector<16x96xf32> to vector<2x96xf32>
    %cst_15 = arith.constant dense<0.000000e+00> : vector<2x96xf32>
    %46 = tpu.matmul %44, %6, %cst_15 {dimension_numbers = #tpu.dot_dimension_numbers<[1], [0], [0], [1], [0, 0, 1, 1], [], []>} : vector<2x96xf32>, vector<96x96xf32>, vector<2x96xf32> -> vector<2x96xf32>
    %47 = arith.addf %46, %45 : vector<2x96xf32>
    %48 = math.tanh %47 : vector<2x96xf32>
    %49 = vector.extract_strided_slice %5 {offsets = [14, 0], sizes = [2, 96], strides = [1, 1]} : vector<16x96xf32> to vector<2x96xf32>
    %cst_16 = arith.constant dense<0.000000e+00> : vector<2x96xf32>
    %50 = tpu.matmul %48, %6, %cst_16 {dimension_numbers = #tpu.dot_dimension_numbers<[1], [0], [0], [1], [0, 0, 1, 1], [], []>} : vector<2x96xf32>, vector<96x96xf32>, vector<2x96xf32> -> vector<2x96xf32>
    %51 = arith.addf %50, %49 : vector<2x96xf32>
    %52 = math.tanh %51 : vector<2x96xf32>
    %cst_17 = arith.constant dense<0.000000e+00> : vector<2x96xf32>
    %53 = tpu.matmul %52, %6, %cst_17 {dimension_numbers = #tpu.dot_dimension_numbers<[1], [0], [0], [1], [0, 0, 1, 1], [], []>} : vector<2x96xf32>, vector<96x96xf32>, vector<2x96xf32> -> vector<2x96xf32>
    %54 = vector.broadcast %0 : vector<1x96xf32> to vector<2x96xf32>
    %55 = arith.addf %53, %54 : vector<2x96xf32>
    %56 = math.tanh %55 : vector<2x96xf32>
    %c32_i32_18 = arith.constant 32 : i32
    %57 = vector.broadcast %c32_i32_18 : i32 to vector<2x96xi32>
    %58 = arith.cmpi sge, %7, %57 : vector<2x96xi32>
    %c96_i32 = arith.constant 96 : i32
    %59 = vector.broadcast %c96_i32 : i32 to vector<2x96xi32>
    %60 = arith.cmpi slt, %7, %59 : vector<2x96xi32>
    %61 = arith.andi %58, %60 : vector<2x96xi1>
    %62 = arith.select %61, %56, %52 : vector<2x96xi1>, vector<2x96xf32>
    %cst_19 = arith.constant dense<0.000000e+00> : vector<2x96xf32>
    %63 = tpu.matmul %62, %6, %cst_19 {dimension_numbers = #tpu.dot_dimension_numbers<[1], [0], [0], [1], [0, 0, 1, 1], [], []>} : vector<2x96xf32>, vector<96x96xf32>, vector<2x96xf32> -> vector<2x96xf32>
    %64 = vector.broadcast %0 : vector<1x96xf32> to vector<2x96xf32>
    %65 = arith.addf %63, %64 : vector<2x96xf32>
    %66 = math.tanh %65 : vector<2x96xf32>
    %c64_i32_20 = arith.constant 64 : i32
    %67 = vector.broadcast %c64_i32_20 : i32 to vector<2x96xi32>
    %68 = arith.cmpi sge, %7, %67 : vector<2x96xi32>
    %c96_i32_21 = arith.constant 96 : i32
    %69 = vector.broadcast %c96_i32_21 : i32 to vector<2x96xi32>
    %70 = arith.cmpi slt, %7, %69 : vector<2x96xi32>
    %71 = arith.andi %68, %70 : vector<2x96xi1>
    %72 = arith.select %71, %66, %62 : vector<2x96xi1>, vector<2x96xf32>
    %c0_22 = arith.constant 0 : index
    %c0_23 = arith.constant 0 : index
    %73 = vector.load %arg4[%c0_22, %c0_23] : memref<96x24xf32, #tpu.memory_space<vmem>>, vector<96x24xf32>
    %cst_24 = arith.constant dense<0.000000e+00> : vector<2x24xf32>
    %74 = tpu.matmul %72, %73, %cst_24 {dimension_numbers = #tpu.dot_dimension_numbers<[1], [0], [0], [1], [0, 0, 1, 1], [], []>} : vector<2x96xf32>, vector<96x24xf32>, vector<2x24xf32> -> vector<2x24xf32>
    %c0_25 = arith.constant 0 : index
    %c0_26 = arith.constant 0 : index
    %75 = vector.load %arg5[%c0_25, %c0_26] : memref<1x24xf32, #tpu.memory_space<vmem>>, vector<1x24xf32>
    %76 = vector.broadcast %75 : vector<1x24xf32> to vector<2x24xf32>
    %77 = arith.addf %74, %76 : vector<2x24xf32>
    %c0_27 = arith.constant 0 : index
    %c0_28 = arith.constant 0 : index
    %78 = vector.load %arg6[%c0_27, %c0_28] : memref<2x24xf32, #tpu.memory_space<vmem>>, vector<2x24xf32>
    tpu.vector_store %arg6[%c0_27, %c0_28], %77 {strides = array<i32>} : memref<2x24xf32, #tpu.memory_space<vmem>>, vector<2x24xf32>,
    return
  }
}

</mosaic_0001>

<bundles_post_ra>
// kernel: tile.8
= control target key start
LH: loop header
LB: loop body
LE: loop exit
PB: predicated region body
PF: predicated region fallthrough
CT: control target
= control target key end

     0   :  { %s22_s0 = inlined_call_operand.vmem [shape: f32[8], index: 0, kind: input, shape index: {}]   ;;  %s23_s1 = inlined_call_operand.vmem [shape: f32[3,8], index: 1, kind: output, shape index: {}]  }
   0x1   :  { %v4_v0 = vld [vmem:[%s22_s0] ss:$0 sm:$0xff] }
   0x2   :  { %5 = vst [vmem:[%s23_s1] sm:$0xf] %v4_v0 }

// kernel: tile.9
= control target key start
LH: loop header
LB: loop body
LE: loop exit
PB: predicated region body
PF: predicated region fallthrough
CT: control target
= control target key end

     0   :  { %vm7_vm0 = vcmask 64512   ;;  %s30_s8 = smov 8   ;;  %vm13_vm1 = vcmask 195712   ;;  %vm19_vm2 = vcmask 130112   ;;  %s47_s0 = inlined_call_operand.vmem [shape: f32[3,8], index: 0, kind: input, shape index: {}]   ;;  %s48_s1 = inlined_call_operand.vmem [shape: f32[1,24], index: 1, kind: output, shape index: {}]  }
   0x1   :  { %v4_v0 = vld [vmem:[%s47_s0] sm:$0xf]  ;;  %s29_s0 = smov 16  }
   0x2   :  { %5 = vst [vmem:[#allocation1] sm:$0xf] %v4_v0 }
   0x9   :  { %v10_v1 = vld [vmem:[#allocation1 + $0x2] sm:$0x1]   ;;  %v6_v2 = vld [vmem:[#allocation1] sm:$0x1]   ;;  %v16_v3 = vld [vmem:[#allocation1 + $0x1] sm:$0x1]  }
   0xa   :  { %11 = vrot.lane.b32.xlu0 %v10_v1, %s29_s0  ;;  %8 = vst.msk [vmem:[#allocation0] sm:$0x1] %vm7_vm0, %v6_v2  }
   0xe   :  { %17 = vrot.lane.b32.xlu0 %v16_v3, %s30_s8 }
  0x7c   :  { %v12_v4 = vpop.permute.xlu0 %11  }
  0x7d   :  { %14 = vst.msk [vmem:[#allocation0] sm:$0x1] %vm13_vm1, %v12_v4  }
  0x80   :  { %v18_v5 = vpop.permute.xlu0 %17  }
  0x81   :  { %20 = vst.msk [vmem:[#allocation0] sm:$0x1] %vm19_vm2, %v18_v5  }
  0x88   :  { %v24_v6 = vld [vmem:[#allocation0] sm:$0x1] }
  0x89   :  { %26 = vst [vmem:[%s48_s1] sm:$0x1] %v24_v6 }

// kernel: single_rnn_forward.1
= control target key start
LH: loop header
LB: loop body
LE: loop exit
PB: predicated region body
PF: predicated region fallthrough
CT: control target
= control target key end

     0   :  { %v1679_v0 = vmov 0.0|0.0   ;;  %vm1680_vm0 = vmmov 0   ;;  %v1681_v4 = vmov 0.0   ;;  %vm33_vm1 = vcmask 64512   ;;  %s2004_s3 = inlined_call_operand.vmem [shape: f32[96,96], index: 3, kind: input, shape index: {}]   ;;  %s2005_s1 = inlined_call_operand.vmem [shape: f32[8,96], index: 1, kind: input, shape index: {}]   ;;  %s2006_s0 = inlined_call_operand.vmem [shape: f32[16,8], index: 0, kind: input, shape index: {}]   ;;  %s2007_s2 = inlined_call_operand.vmem [shape: f32[1,96], index: 2, kind: input, shape index: {}]   ;;  %s2008_s4 = inlined_call_operand.vmem [shape: f32[96,24], index: 4, kind: input, shape index: {}]   ;;  %s2009_s5 = inlined_call_operand.vmem [shape: f32[1,24], index: 5, kind: input, shape index: {}]   ;;  %s2010_s6 = inlined_call_operand.vmem [shape: f32[2,24], index: 6, kind: output, shape index: {}]  }
   0x1   :  { %1458 = vmatprep.subr.bf16.mxu1 %v1679_v0  ;;  %v115_v1 = vld [vmem:[%s2004_s3] sm:$0xff]  ;;  %v116_v2 = vld [vmem:[%s2004_s3 + $0x8] sm:$0xff]  ;;  %v117_v3 = vld [vmem:[%s2004_s3 + $0x10] sm:$0xff]  ;;  %1185 = vmatprep.mubr.msk.f32.mxu1 %vm1680_vm0, %v1681_v4  ;;  %v127_v30 = vlaneseq  ;;  %vm129_vm3 = vcmask 785408   ;;  %vm990_vm10 = vcmask 189440  }
   0x2   :  { %v1729_v5 = vpack.c.bf16 %v116_v2, %v115_v1  ;;  %v118_v6 = vld [vmem:[%s2004_s3 + $0x18] sm:$0xff]  ;;  %v26_v8 = vld [vmem:[%s2005_s1] sm:$0xff]  ;;  %v120_v11 = vld [vmem:[%s2004_s3 + $0x28] sm:$0xff] }
   0x3   :  { %v1735_v7 = vpack.c.bf16 %v118_v6, %v117_v3  ;;  %v24_v9 = vld [vmem:[%s2006_s0] sm:$0xff]  ;;  %1156 = vmatprep.subr.mxu0 %v26_v8  ;;  %v25_v12 = vld [vmem:[%s2006_s0 + $0x8] sm:$0xff]  ;;  %v121_v14 = vld [vmem:[%s2004_s3 + $0x30] sm:$0xff]  ;;  %v1830_v31 = vand.u32 127, %v127_v30 }
   0x4   :  { %1460 = vmatpush3.bf16.msra.mxu1 %v1729_v5  ;;  %v119_v10 = vld [vmem:[%s2004_s3 + $0x20] sm:$0xff]  ;;  %1157 = vmatpush3.msra.mxu0 %v26_v8  ;;  %v122_v15 = vld [vmem:[%s2004_s3 + $0x38] sm:$0xff]  ;;  %v124_v18 = vld [vmem:[%s2004_s3 + $0x48] sm:$0xff] }
   0x5   :  { %1461 = vmatprep.subr.bf16.mxu1 %v1679_v0  ;;  %1158 = vmatprep.mubr.msk.f32.mxu0 %vm33_vm1, %v24_v9  ;;  %v1755_v13 = vpack.c.bf16 %v120_v11, %v119_v10  ;;  %v1769_v16 = vpack.c.bf16 %v122_v15, %v121_v14  ;;  %v123_v17 = vld [vmem:[%s2004_s3 + $0x40] sm:$0xff]  ;;  %v125_v20 = vld [vmem:[%s2004_s3 + $0x50] sm:$0xff]  ;;  %v126_v21 = vld [vmem:[%s2004_s3 + $0x58] sm:$0xff]  ;;  %vm205_vm2 = vcmp.lt.s32.totalorder %v1830_v31, 32  ;;  %vm285_vm4 = vcmp.lt.s32.totalorder %v1830_v31, 64 }
   0x6   :  { %1159 = vmatmul.mubr.msk.f32.vlgmr.msra.gmra.mrb[0].mxu0 %vm33_vm1, %v25_v12  ;;  %1476 = vmatprep.subr.bf16.mxu0 %v1679_v0  ;;  %v1781_v19 = vpack.c.bf16 %v124_v18, %v123_v17  ;;  %v1793_v22 = vpack.c.bf16 %v126_v21, %v125_v20  ;;  %v1824_v25 = vld [vmem:[%s2007_s2] ss:$0 sm:$0xff]  ;;  %v899_v9 = vld [vmem:[%s2008_s4 + $0x8] sm:$0xff]  ;;  %v900_v10 = vld [vmem:[%s2008_s4 + $0x10] sm:$0xff]  ;;  %vm817_vm5 = vcmp.ge.s32.totalorder %v1830_v31, 32  ;;  %vm818_vm6 = vcmp.lt.s32.totalorder %v1830_v31, 96 }
   0x7   :  { %1478 = vmatpush3.bf16.msra.mxu0 %v1729_v5  ;;  %1212 = vmatprep.mubr.msk.f32.mxu0 %vm1680_vm0, %v1681_v4  ;;  %v898_v8 = vld [vmem:[%s2008_s4] sm:$0xff]  ;;  %v901_v12 = vld [vmem:[%s2008_s4 + $0x18] sm:$0xff]  ;;  %vm819_vm7 = vmand %vm817_vm5, %vm818_vm6  ;;  %vm895_vm8 = vcmp.ge.s32.totalorder %v1830_v31, 64 }
   0x8   :  { %1463 = vmatpush3.bf16.msra.mxu1 %v1735_v7  ;;  %1479 = vmatprep.subr.bf16.mxu0 %v1679_v0  ;;  %v1639_v11 = vpack.c.bf16 %v899_v9, %v898_v8  ;;  %v902_v18 = vld [vmem:[%s2008_s4 + $0x20] sm:$0xff]  ;;  %v904_v21 = vld [vmem:[%s2008_s4 + $0x30] sm:$0xff]  ;;  %vm896_vm9 = vmand %vm895_vm8, %vm818_vm6 }
   0x9   :  { %1464 = vmatprep.subr.bf16.mxu1 %v1679_v0 }
   0xb   :  { %1481 = vmatpush3.bf16.msra.mxu0 %v1735_v7 }
   0xc   :  { %1466 = vmatpush3.bf16.msra.mxu1 %v1755_v13  ;;  %1482 = vmatprep.subr.bf16.mxu0 %v1679_v0 }
   0xd   :  { %1467 = vmatprep.subr.bf16.mxu1 %v1679_v0 }
   0xf   :  { %1484 = vmatpush3.bf16.msra.mxu0 %v1755_v13 }
  0x10   :  { %1469 = vmatpush3.bf16.msra.mxu1 %v1769_v16  ;;  %1485 = vmatprep.subr.bf16.mxu0 %v1679_v0 }
  0x11   :  { %1470 = vmatprep.subr.bf16.mxu1 %v1679_v0 }
  0x13   :  { %1487 = vmatpush3.bf16.msra.mxu0 %v1769_v16 }
  0x14   :  { %1472 = vmatpush3.bf16.msra.mxu1 %v1781_v19  ;;  %1488 = vmatprep.subr.bf16.mxu0 %v1679_v0 }
  0x15   :  { %1473 = vmatprep.subr.bf16.mxu1 %v1679_v0 }
  0x17   :  { %1490 = vmatpush3.bf16.msra.mxu0 %v1781_v19 }
  0x18   :  { %1475 = vmatpush3.bf16.msra.mxu1 %v1793_v22  ;;  %1491 = vmatprep.subr.bf16.mxu0 %v1679_v0 }
  0x19   :  { %1494 = vmatprep.subr.bf16.mxu1 %v1679_v0 }
  0x1b   :  { %1186 = vmatmul.mubr.f32.vlgmr.msra.gmra.mrb[0].mxu1 %v1681_v4  ;;  %1493 = vmatpush3.bf16.msra.mxu0 %v1793_v22 }
  0x1c   :  { %1496 = vmatpush3.bf16.msra.mxu1 %v1729_v5  ;;  %1239 = vmatprep.mubr.msk.f32.mxu1 %vm1680_vm0, %v1681_v4 }
  0x1d   :  { %1497 = vmatprep.subr.bf16.mxu1 %v1679_v0  ;;  %1512 = vmatprep.subr.bf16.mxu0 %v1679_v0 }
  0x20   :  { %1499 = vmatpush3.bf16.msra.mxu1 %v1735_v7 }
  0x21   :  { %1500 = vmatprep.subr.bf16.mxu1 %v1679_v0 }
  0x24   :  { %1502 = vmatpush3.bf16.msra.mxu1 %v1755_v13 }
  0x25   :  { %1503 = vmatprep.subr.bf16.mxu1 %v1679_v0 }
  0x28   :  { %1505 = vmatpush3.bf16.msra.mxu1 %v1769_v16 }
  0x29   :  { %1506 = vmatprep.subr.bf16.mxu1 %v1679_v0 }
  0x2c   :  { %1508 = vmatpush3.bf16.msra.mxu1 %v1781_v19 }
  0x2d   :  { %1509 = vmatprep.subr.bf16.mxu1 %v1679_v0 }
  0x30   :  { %1511 = vmatpush3.bf16.msra.mxu1 %v1793_v22 }
  0x31   :  { %1530 = vmatprep.subr.bf16.mxu1 %v1679_v0 }
  0xd9   :  { %v1819_v23 = vpop.f32.mrb[0].mxu0 }
  0xda   :  { %v106_v24 = vpop.f32.mrb[1].mxu0  ;;  %v112_v50 = vadd.f32 %v1819_v23, %v1824_v25 }
  0xdb   :  { %v1827_v26 = vadd.f32 %v1824_v25, %v106_v24  ;;  %v906_v24 = vld [vmem:[%s2008_s4 + $0x40] sm:$0xff] }
  0xdc   :  { %v515_v55 = vrot.slane %v112_v50, 2  ;;  %v591_v60 = vrot.slane %v112_v50, 4  ;;  %v667_v2 = vrot.slane %v112_v50, 6 }
  0xdd   :  { %v209_v34 = vrot.slane %v1827_v26, 2  ;;  %v288_v40 = vrot.slane %v1827_v26, 4  ;;  %v364_v45 = vrot.slane %v1827_v26, 6 }
  0xee   :  { %v199_v27 = vpop.f32.mrb[0].mxu1 }
  0xef   :  { %v200_v28 = vadd.f32 %v199_v27, %v1827_v26  ;;  %v1187_v29 = vpop.f32.mrb[1].mxu1  ;;  %v907_v26 = vld [vmem:[%s2008_s4 + $0x48] sm:$0xff] }
  0xf0   :  { %v1651_v27 = vpack.c.bf16 %v907_v26, %v906_v24  ;;  %v909_v29 = vld [vmem:[%s2008_s4 + $0x58] sm:$0xff] }
  0xf1   :  { %1659 = vtanh.f32 %v200_v28  ;;  %v908_v28 = vld [vmem:[%s2008_s4 + $0x50] sm:$0xff] }
  0xf2   :  { %v1654_v30 = vpack.c.bf16 %v909_v29, %v908_v28 }
  0xfb   :  { %v1660_v32 = vpop.eup %1659 }
  0xfc   :  { %v207_v33 = vsel %vm205_vm2, %v1660_v32, 0.0 }
  0xfd   :  { %1213 = vmatmul.mubr.msk.f32.vlgmr.msra.gmra.mrb[2].mxu0 %vm129_vm3, %v207_v33 }
  0xfe   :  { %1514 = vmatpush3.bf16.msra.mxu0 %v1729_v5  ;;  %1266 = vmatprep.mubr.msk.f32.mxu0 %vm1680_vm0, %v1681_v4 }
  0xff   :  { %1515 = vmatprep.subr.bf16.mxu0 %v1679_v0 }
 0x102   :  { %1517 = vmatpush3.bf16.msra.mxu0 %v1735_v7 }
 0x103   :  { %1518 = vmatprep.subr.bf16.mxu0 %v1679_v0 }
 0x106   :  { %1520 = vmatpush3.bf16.msra.mxu0 %v1755_v13 }
 0x107   :  { %1521 = vmatprep.subr.bf16.mxu0 %v1679_v0 }
 0x10a   :  { %1523 = vmatpush3.bf16.msra.mxu0 %v1769_v16 }
 0x10b   :  { %1524 = vmatprep.subr.bf16.mxu0 %v1679_v0 }
 0x10e   :  { %1526 = vmatpush3.bf16.msra.mxu0 %v1781_v19 }
 0x10f   :  { %1527 = vmatprep.subr.bf16.mxu0 %v1679_v0 }
 0x112   :  { %1529 = vmatpush3.bf16.msra.mxu0 %v1793_v22 }
 0x113   :  { %1548 = vmatprep.subr.bf16.mxu0 %v1679_v0 }
 0x1d0   :  { %v280_v35 = vpop.f32.mrb[2].mxu0 }
 0x1d1   :  { %v281_v36 = vadd.f32 %v280_v35, %v209_v34  ;;  %v1214_v37 = vpop.f32.mrb[3].mxu0 }
 0x1d2   :  { %v1008_v37 = vld [vmem:[%s2009_s5] ss:$0 sm:$0xff] }
 0x1d3   :  { %1661 = vtanh.f32 %v281_v36 }
 0x1dd   :  { %v1662_v38 = vpop.eup %1661 }
 0x1de   :  { %v287_v39 = vsel %vm285_vm4, %v1662_v38, %v207_v33 }
 0x1df   :  { %1240 = vmatmul.mubr.msk.f32.vlgmr.msra.gmra.mrb[2].mxu1 %vm129_vm3, %v287_v39 }
 0x1e0   :  { %1532 = vmatpush3.bf16.msra.mxu1 %v1729_v5  ;;  %1293 = vmatprep.mubr.msk.f32.mxu1 %vm1680_vm0, %v1681_v4 }
 0x1e1   :  { %1533 = vmatprep.subr.bf16.mxu1 %v1679_v0 }
 0x1e4   :  { %1535 = vmatpush3.bf16.msra.mxu1 %v1735_v7 }
 0x1e5   :  { %1536 = vmatprep.subr.bf16.mxu1 %v1679_v0 }
 0x1e8   :  { %1538 = vmatpush3.bf16.msra.mxu1 %v1755_v13 }
 0x1e9   :  { %1539 = vmatprep.subr.bf16.mxu1 %v1679_v0 }
 0x1ec   :  { %1541 = vmatpush3.bf16.msra.mxu1 %v1769_v16 }
 0x1ed   :  { %1542 = vmatprep.subr.bf16.mxu1 %v1679_v0 }
 0x1f0   :  { %1544 = vmatpush3.bf16.msra.mxu1 %v1781_v19 }
 0x1f1   :  { %1545 = vmatprep.subr.bf16.mxu1 %v1679_v0 }
 0x1f4   :  { %1547 = vmatpush3.bf16.msra.mxu1 %v1793_v22 }
 0x1f5   :  { %1566 = vmatprep.subr.bf16.mxu1 %v1679_v0 }
 0x2b2   :  { %v359_v41 = vpop.f32.mrb[2].mxu1 }
 0x2b3   :  { %v360_v42 = vadd.f32 %v359_v41, %v288_v40  ;;  %v1241_v43 = vpop.f32.mrb[3].mxu1 }
 0x2b5   :  { %1663 = vtanh.f32 %v360_v42 }
 0x2bf   :  { %v1664_v44 = vpop.eup %1663 }
 0x2c0   :  { %1267 = vmatmul.mubr.msk.f32.vlgmr.msra.gmra.mrb[4].mxu0 %vm129_vm3, %v1664_v44 }
 0x2c1   :  { %1550 = vmatpush3.bf16.msra.mxu0 %v1729_v5  ;;  %1320 = vmatprep.mubr.msk.f32.mxu0 %vm1680_vm0, %v1681_v4 }
 0x2c2   :  { %1551 = vmatprep.subr.bf16.mxu0 %v1679_v0 }
 0x2c5   :  { %1553 = vmatpush3.bf16.msra.mxu0 %v1735_v7 }
 0x2c6   :  { %1554 = vmatprep.subr.bf16.mxu0 %v1679_v0 }
 0x2c9   :  { %1556 = vmatpush3.bf16.msra.mxu0 %v1755_v13 }
 0x2ca   :  { %1557 = vmatprep.subr.bf16.mxu0 %v1679_v0 }
 0x2cd   :  { %1559 = vmatpush3.bf16.msra.mxu0 %v1769_v16 }
 0x2ce   :  { %1560 = vmatprep.subr.bf16.mxu0 %v1679_v0 }
 0x2d1   :  { %1562 = vmatpush3.bf16.msra.mxu0 %v1781_v19 }
 0x2d2   :  { %1563 = vmatprep.subr.bf16.mxu0 %v1679_v0 }
 0x2d5   :  { %1565 = vmatpush3.bf16.msra.mxu0 %v1793_v22 }
 0x2d6   :  { %1584 = vmatprep.subr.bf16.mxu0 %v1679_v0 }
 0x393   :  { %v435_v46 = vpop.f32.mrb[4].mxu0 }
 0x394   :  { %v436_v47 = vadd.f32 %v435_v46, %v364_v45  ;;  %v1268_v48 = vpop.f32.mrb[5].mxu0 }
 0x396   :  { %1665 = vtanh.f32 %v436_v47 }
 0x3a0   :  { %v1666_v49 = vpop.eup %1665 }
 0x3a1   :  { %1294 = vmatmul.mubr.msk.f32.vlgmr.msra.gmra.mrb[4].mxu1 %vm129_vm3, %v1666_v49 }
 0x3a2   :  { %1568 = vmatpush3.bf16.msra.mxu1 %v1729_v5  ;;  %1347 = vmatprep.mubr.msk.f32.mxu1 %vm1680_vm0, %v1681_v4 }
 0x3a3   :  { %1569 = vmatprep.subr.bf16.mxu1 %v1679_v0 }
 0x3a6   :  { %1571 = vmatpush3.bf16.msra.mxu1 %v1735_v7 }
 0x3a7   :  { %1572 = vmatprep.subr.bf16.mxu1 %v1679_v0 }
 0x3aa   :  { %1574 = vmatpush3.bf16.msra.mxu1 %v1755_v13 }
 0x3ab   :  { %1575 = vmatprep.subr.bf16.mxu1 %v1679_v0 }
 0x3ae   :  { %1577 = vmatpush3.bf16.msra.mxu1 %v1769_v16 }
 0x3af   :  { %1578 = vmatprep.subr.bf16.mxu1 %v1679_v0 }
 0x3b2   :  { %1580 = vmatpush3.bf16.msra.mxu1 %v1781_v19 }
 0x3b3   :  { %1581 = vmatprep.subr.bf16.mxu1 %v1679_v0 }
 0x3b6   :  { %1583 = vmatpush3.bf16.msra.mxu1 %v1793_v22 }
 0x3b7   :  { %1602 = vmatprep.subr.bf16.mxu1 %v1679_v0 }
 0x474   :  { %v509_v51 = vpop.f32.mrb[4].mxu1 }
 0x475   :  { %v510_v52 = vadd.f32 %v509_v51, %v112_v50  ;;  %v1295_v53 = vpop.f32.mrb[5].mxu1 }
 0x477   :  { %1667 = vtanh.f32 %v510_v52 }
 0x481   :  { %v1668_v54 = vpop.eup %1667 }
 0x482   :  { %1321 = vmatmul.mubr.msk.f32.vlgmr.msra.gmra.mrb[6].mxu0 %vm129_vm3, %v1668_v54 }
 0x483   :  { %1586 = vmatpush3.bf16.msra.mxu0 %v1729_v5  ;;  %1374 = vmatprep.mubr.msk.f32.mxu0 %vm1680_vm0, %v1681_v4 }
 0x484   :  { %1587 = vmatprep.subr.bf16.mxu0 %v1679_v0 }
 0x487   :  { %1589 = vmatpush3.bf16.msra.mxu0 %v1735_v7 }
 0x488   :  { %1590 = vmatprep.subr.bf16.mxu0 %v1679_v0 }
 0x48b   :  { %1592 = vmatpush3.bf16.msra.mxu0 %v1755_v13 }
 0x48c   :  { %1593 = vmatprep.subr.bf16.mxu0 %v1679_v0 }
 0x48f   :  { %1595 = vmatpush3.bf16.msra.mxu0 %v1769_v16 }
 0x490   :  { %1596 = vmatprep.subr.bf16.mxu0 %v1679_v0 }
 0x493   :  { %1598 = vmatpush3.bf16.msra.mxu0 %v1781_v19 }
 0x494   :  { %1599 = vmatprep.subr.bf16.mxu0 %v1679_v0 }
 0x497   :  { %1601 = vmatpush3.bf16.msra.mxu0 %v1793_v22 }
 0x498   :  { %1620 = vmatprep.subr.bf16.mxu0 %v1679_v0 }
 0x555   :  { %v586_v56 = vpop.f32.mrb[6].mxu0 }
 0x556   :  { %v587_v57 = vadd.f32 %v586_v56, %v515_v55  ;;  %v1322_v58 = vpop.f32.mrb[7].mxu0 }
 0x558   :  { %1669 = vtanh.f32 %v587_v57 }
 0x562   :  { %v1670_v59 = vpop.eup %1669 }
 0x563   :  { %1348 = vmatmul.mubr.msk.f32.vlgmr.msra.gmra.mrb[6].mxu1 %vm129_vm3, %v1670_v59 }
 0x564   :  { %1604 = vmatpush3.bf16.msra.mxu1 %v1729_v5  ;;  %1401 = vmatprep.mubr.msk.f32.mxu1 %vm1680_vm0, %v1681_v4 }
 0x565   :  { %1605 = vmatprep.subr.bf16.mxu1 %v1679_v0 }
 0x568   :  { %1607 = vmatpush3.bf16.msra.mxu1 %v1735_v7 }
 0x569   :  { %1608 = vmatprep.subr.bf16.mxu1 %v1679_v0 }
 0x56c   :  { %1610 = vmatpush3.bf16.msra.mxu1 %v1755_v13 }
 0x56d   :  { %1611 = vmatprep.subr.bf16.mxu1 %v1679_v0 }
 0x570   :  { %1613 = vmatpush3.bf16.msra.mxu1 %v1769_v16 }
 0x571   :  { %1614 = vmatprep.subr.bf16.mxu1 %v1679_v0 }
 0x574   :  { %1616 = vmatpush3.bf16.msra.mxu1 %v1781_v19 }
 0x575   :  { %1617 = vmatprep.subr.bf16.mxu1 %v1679_v0 }
 0x578   :  { %1619 = vmatpush3.bf16.msra.mxu1 %v1793_v22 }
 0x579   :  { %1638 = vmatprep.subr.bf16.mxu1 %v1679_v0 }
 0x636   :  { %v662_v61 = vpop.f32.mrb[6].mxu1 }
 0x637   :  { %v663_v62 = vadd.f32 %v662_v61, %v591_v60  ;;  %v1349_v63 = vpop.f32.mrb[7].mxu1 }
 0x639   :  { %1671 = vtanh.f32 %v663_v62 }
 0x643   :  { %v1672_v1 = vpop.eup %1671 }
 0x644   :  { %1375 = vmatmul.mubr.msk.f32.vlgmr.msra.gmra.mrb[8].mxu0 %vm129_vm3, %v1672_v1 }
 0x645   :  { %1622 = vmatpush3.bf16.msra.mxu0 %v1729_v5  ;;  %1428 = vmatprep.mubr.msk.f32.mxu0 %vm1680_vm0, %v1681_v4 }
 0x646   :  { %1623 = vmatprep.subr.bf16.mxu0 %v1679_v0 }
 0x649   :  { %1625 = vmatpush3.bf16.msra.mxu0 %v1735_v7 }
 0x64a   :  { %1626 = vmatprep.subr.bf16.mxu0 %v1679_v0 }
 0x64d   :  { %1628 = vmatpush3.bf16.msra.mxu0 %v1755_v13  ;;  %v1642_v13 = vpack.c.bf16 %v901_v12, %v900_v10 }
 0x64e   :  { %1629 = vmatprep.subr.bf16.mxu0 %v1679_v0 }
 0x651   :  { %1631 = vmatpush3.bf16.msra.mxu0 %v1769_v16 }
 0x652   :  { %1632 = vmatprep.subr.bf16.mxu0 %v1679_v0 }
 0x655   :  { %1634 = vmatpush3.bf16.msra.mxu0 %v1781_v19  ;;  %v903_v19 = vld [vmem:[%s2008_s4 + $0x28] sm:$0xff] }
 0x656   :  { %1635 = vmatprep.subr.bf16.mxu0 %v1679_v0  ;;  %v1645_v20 = vpack.c.bf16 %v903_v19, %v902_v18 }
 0x659   :  { %1637 = vmatpush3.bf16.msra.mxu0 %v1793_v22  ;;  %v905_v22 = vld [vmem:[%s2008_s4 + $0x38] sm:$0xff] }
 0x65a   :  { %v1648_v23 = vpack.c.bf16 %v905_v22, %v904_v21 }
 0x717   :  { %v738_v3 = vpop.f32.mrb[8].mxu0 }
 0x718   :  { %v739_v5 = vadd.f32 %v738_v3, %v667_v2  ;;  %v1376_v6 = vpop.f32.mrb[9].mxu0 }
 0x71a   :  { %1673 = vtanh.f32 %v739_v5 }
 0x724   :  { %v1674_v7 = vpop.eup %1673 }
 0x725   :  { %1402 = vmatmul.mubr.msk.f32.vlgmr.msra.gmra.mrb[8].mxu1 %vm129_vm3, %v1674_v7 }
 0x726   :  { %1455 = vmatprep.mubr.msk.f32.mxu1 %vm1680_vm0, %v1681_v4  ;;  %1640 = vmatpush3.bf16.msra.mxu1 %v1639_v11 }
 0x727   :  { %1641 = vmatprep.subr.bf16.mxu1 %v1679_v0 }
 0x72a   :  { %1643 = vmatpush3.bf16.msra.mxu1 %v1642_v13 }
 0x72b   :  { %1644 = vmatprep.subr.bf16.mxu1 %v1679_v0 }
 0x72e   :  { %1646 = vmatpush3.bf16.msra.mxu1 %v1645_v20 }
 0x72f   :  { %1647 = vmatprep.subr.bf16.mxu1 %v1679_v0 }
 0x732   :  { %1649 = vmatpush3.bf16.msra.mxu1 %v1648_v23 }
 0x733   :  { %1650 = vmatprep.subr.bf16.mxu1 %v1679_v0 }
 0x736   :  { %1652 = vmatpush3.bf16.msra.mxu1 %v1651_v27 }
 0x737   :  { %1653 = vmatprep.subr.bf16.mxu1 %v1679_v0 }
 0x73a   :  { %1655 = vmatpush3.bf16.msra.mxu1 %v1654_v30 }
 0x7f8   :  { %v812_v4 = vpop.f32.mrb[8].mxu1 }
 0x7f9   :  { %v813_v14 = vadd.f32 %v1824_v25, %v812_v4  ;;  %v1403_v15 = vpop.f32.mrb[9].mxu1 }
 0x7fb   :  { %1675 = vtanh.f32 %v813_v14 }
 0x805   :  { %v1676_v16 = vpop.eup %1675 }
 0x806   :  { %v820_v17 = vsel %vm819_vm7, %v1676_v16, %v1674_v7 }
 0x807   :  { %1429 = vmatmul.mubr.msk.f32.vlgmr.msra.gmra.mrb[10].mxu0 %vm129_vm3, %v820_v17 }
 0x8da   :  { %v890_v32 = vpop.f32.mrb[10].mxu0 }
 0x8db   :  { %v891_v33 = vadd.f32 %v1824_v25, %v890_v32  ;;  %v1430_v34 = vpop.f32.mrb[11].mxu0 }
 0x8dd   :  { %1677 = vtanh.f32 %v891_v33 }
 0x8e7   :  { %v1678_v35 = vpop.eup %1677 }
 0x8e8   :  { %v897_v36 = vsel %vm896_vm9, %v1678_v35, %v820_v17 }
 0x8e9   :  { %1456 = vmatmul.mubr.msk.f32.vlgmr.msra.gmra.mrb[10].mxu1 %vm129_vm3, %v897_v36 }
 0x9bc   :  { %v986_v0 = vpop.f32.mrb[10].mxu1 }
 0x9bd   :  { %v987_v38 = vadd.f32 %v1008_v37, %v986_v0  ;;  %v1457_v39 = vpop.f32.mrb[11].mxu1 }
 0x9bf   :  { %991 = vst.msk [vmem:[%s2010_s6] sm:$0x3] %vm990_vm10, %v987_v38 }

</bundles_post_ra>
